<compile_context>
chip_gen: v5e
topology: v5e:2x2
jax: 0.10.0
libtpu: 0.0.40
codegen_flags: <defaults>
</compile_context>

<pallas_src>
import functools
import math

import jax
import jax.numpy as jnp
import numpy as np
from jax.experimental import pallas as pl
from jax.experimental.pallas import tpu as pltpu

_INV_SQRT2 = 1.0 / math.sqrt(2.0)
_LANE = 128


def _round_up(x, m):
    return ((x + m - 1) // m) * m


def _cdiv(a, b):
    return -(-a // b)


# ---------------------------------------------------------------------------
# Fused Pallas kernel: all (pre-normalized) linear layers + GELU in one body.
# Weights/biases are resident (same block every grid step); intermediate
# activations stay in vregs/VMEM and never round-trip to HBM.
# ---------------------------------------------------------------------------
def _fused_lipshitz_mlp_kernel(x_ref, *refs, n_layers, last_layer_linear,
                               compute_dtype):
    o_ref = refs[-1]
    wb_refs = refs[:-1]
    assert len(wb_refs) == 2 * n_layers

    h = x_ref[...].astype(jnp.float32)                    # [TILE_N, D0]
    for i in range(n_layers):
        w_ref = wb_refs[2 * i]                             # [D_in, D_out], compute_dtype
        b_ref = wb_refs[2 * i + 1]                         # [1, D_out], f32

        # MXU matmul: bf16 (or f32) operands, f32 accumulation.
        y = jnp.dot(h.astype(compute_dtype), w_ref[...],
                    preferred_element_type=jnp.float32)
        y = y + b_ref[...]

        is_last = i == n_layers - 1
        if not (is_last and last_layer_linear):
            # torch.nn.functional.gelu default = exact (erf) GELU.
            y = 0.5 * y * (1.0 + jax.lax.erf(y * _INV_SQRT2))
        h = y

    o_ref[...] = h.astype(o_ref.dtype)


# ---------------------------------------------------------------------------
# Wrapper: hoisted weight normalization, padding / transposes (layout
# plumbing), tile policy, and the fused pallas_call.
# ---------------------------------------------------------------------------
def lipshitz_mlp_forward(x, params, last_layer_linear, *, tile_n=1024,
                         compute_dtype=jnp.bfloat16, out_dtype=None):
    n, d_in = x.shape
    n_layers = len(params)
    assert n_layers >= 1
    out_dtype = x.dtype if out_dtype is None else out_dtype

    # Feature dims (PyTorch weight layout is [out, in]); pad to lane multiples.
    dims = [d_in] + [int(w.shape[0]) for (w, _, _) in params]
    dims_pad = [_round_up(d, _LANE) for d in dims]

    # ---- batch tile policy ------------------------------------------------
    # Pad the batch only to a multiple of 8, then split it into num_tiles
    # equal tiles (each a multiple of 8).  Guarantee >= 2 grid steps whenever
    # possible so the "parallel" axis can be sharded across v7x's 2 TCs, and
    # keep padding waste to a few rows (instead of up to a whole tile).
    tile_target = max(8, _round_up(int(tile_n), 8))
    n_pad8 = _round_up(max(n, 1), 8)
    if n_pad8 >= 16:
        num_tiles = max(2, _cdiv(n_pad8, tile_target))
    else:
        num_tiles = 1
    tile = _round_up(_cdiv(n_pad8, num_tiles), 8)
    n_pad = tile * num_tiles
    grid = (num_tiles,)

    x_p = jnp.pad(x.astype(jnp.float32),
                  ((0, n_pad - n), (0, dims_pad[0] - d_in)))

    # ---- hoisted Lipschitz normalization (pure JAX, once per call) --------
    operands = [x_p]
    in_specs = [pl.BlockSpec((tile, dims_pad[0]), lambda g: (g, 0))]
    for i, (w, b, c) in enumerate(params):
        d_out, d_in_i = int(w.shape[0]), int(w.shape[1])
        w32 = w.astype(jnp.float32)
        softplus_c = jax.nn.softplus(jnp.reshape(c, ()).astype(jnp.float32))
        absrowsum = jnp.sum(jnp.abs(w32), axis=1)                  # [d_out]
        scale = jnp.where(absrowsum > 0.0,
                          softplus_c / jnp.maximum(absrowsum, 1e-30),
                          1.0)
        scale = jnp.minimum(scale, 1.0)
        w_n = w32 * scale[:, None]                                 # [d_out, d_in]

        # Pre-transpose to [D_in, D_out] (MXU-ready, lane-dense output) and
        # cast to the MXU operand dtype once, in the wrapper.
        w_t = jnp.pad(jnp.transpose(w_n),
                      ((0, dims_pad[i] - d_in_i),
                       (0, dims_pad[i + 1] - d_out))).astype(compute_dtype)
        b_p = jnp.pad(jnp.reshape(b, (1, -1)).astype(jnp.float32),
                      ((0, 0), (0, dims_pad[i + 1] - d_out)))

        operands.append(w_t)
        in_specs.append(pl.BlockSpec((dims_pad[i], dims_pad[i + 1]),
                                     lambda g: (0, 0)))
        operands.append(b_p)
        in_specs.append(pl.BlockSpec((1, dims_pad[i + 1]), lambda g: (0, 0)))

    out_spec = pl.BlockSpec((tile, dims_pad[-1]), lambda g: (g, 0))
    out_shape = jax.ShapeDtypeStruct((n_pad, dims_pad[-1]), out_dtype)

    # ---- advisory cost + VMEM headroom ------------------------------------
    flops = 2 * n_pad * sum(dims_pad[i] * dims_pad[i + 1]
                            for i in range(n_layers))
    transcendentals = n_pad * sum(
        dims_pad[i + 1] for i in range(n_layers)
        if not (i == n_layers - 1 and last_layer_linear))
    bytes_accessed = int(
        4 * n_pad * dims_pad[0]
        + jnp.dtype(out_dtype).itemsize * n_pad * dims_pad[-1]
        + sum(int(np.prod(op.shape)) * op.dtype.itemsize
              for op in operands[1:]))
    cost = pl.CostEstimate(flops=flops, transcendentals=transcendentals,
                           bytes_accessed=bytes_accessed)

    w_itemsize = jnp.dtype(compute_dtype).itemsize
    weight_bytes = sum(dims_pad[i] * dims_pad[i + 1]
                       for i in range(n_layers)) * w_itemsize
    bias_bytes = sum(dims_pad[1:]) * 4
    act_bytes = tile * (dims_pad[0] + dims_pad[-1]) * 4 * 2     # double-buffered
    interm_bytes = tile * max(dims_pad) * 4 * 3                 # live intermediates
    vmem_est = 2 * (weight_bytes + bias_bytes) + act_bytes + interm_bytes
    vmem_limit = int(min(max(2 * vmem_est, 32 << 20), 60 << 20))

    kernel = functools.partial(_fused_lipshitz_mlp_kernel,
                               n_layers=n_layers,
                               last_layer_linear=last_layer_linear,
                               compute_dtype=compute_dtype)

    out_p = pl.pallas_call(
        kernel,
        out_shape=out_shape,
        grid_spec=pltpu.PrefetchScalarGridSpec(
            num_scalar_prefetch=0,
            grid=grid,
            in_specs=in_specs,
            out_specs=out_spec,
        ),
        compiler_params=pltpu.CompilerParams(
            dimension_semantics=("parallel",),
            vmem_limit_bytes=vmem_limit),
        cost_estimate=cost,
    )(*operands)

    # NOTE: this slice is a separate (cheap) XLA copy back to the true shape.
    return out_p[:n, :dims[-1]]


# ---------------------------------------------------------------------------
# Parameter initialization (mirrors leaky_relu_init + LipshitzMLP.__init__)
# ---------------------------------------------------------------------------
def init_lipshitz_mlp_params(key, in_channels, nr_out_channels_per_layer,
                             last_layer_linear):
    params = []
    n_layers = len(nr_out_channels_per_layer)
    cur_in = in_channels
    for i in range(n_layers):
        cur_out = nr_out_channels_per_layer[i]
        key, sub = jax.random.split(key)
        if last_layer_linear and i == n_layers - 1:
            negative_slope = 1.0
        else:
            negative_slope = 0.0
        gain = np.sqrt(2.0 / (1.0 + negative_slope ** 2))
        std = gain * np.sqrt(2.0 / (cur_in + cur_out))
        lim = std * np.sqrt(3.0)
        w = jax.random.uniform(sub, (cur_out, cur_in), jnp.float32,
                               minval=-lim, maxval=lim)
        b = jnp.zeros((1, cur_out), jnp.float32)
        max_w = jnp.max(jnp.sum(jnp.abs(w), axis=1))
        c = jnp.ones((1, 1), jnp.float32) * max_w * 2.0
        params.append((w, b, c))
        cur_in = cur_out
    return params


# Pure-JAX reference for correctness check (mirrors LipshitzMLP.forward).
def lipshitz_mlp_reference(x, params, last_layer_linear):
    n_layers = len(params)
    for i, (w, b, c) in enumerate(params):
        softplus_c = jax.nn.softplus(c[0, 0])
        absrowsum = jnp.sum(jnp.abs(w), axis=1)
        scale = jnp.minimum(softplus_c / absrowsum, 1.0)
        w_n = w * scale[:, None]
        x = x @ w_n.T + b[0]
        if not (i == n_layers - 1 and last_layer_linear):
            x = 0.5 * x * (1.0 + jax.lax.erf(x * _INV_SQRT2))
    return x


if __name__ == "__main__":
    key = jax.random.PRNGKey(0)
    key, kx, kp = jax.random.split(key, 3)

    # Config 1: tiny shapes consistent with the module (grid of 2 tiles so a
    # v7x chip can use both TensorCores even at this small batch).
    batch = 16
    in_channels = 16
    layer_sizes = [32, 32, 8]
    last_layer_linear = True

    x = jax.random.normal(kx, (batch, in_channels), jnp.float32)
    params = init_lipshitz_mlp_params(kp, in_channels, layer_sizes,
                                      last_layer_linear)
    ref = lipshitz_mlp_reference(x, params, last_layer_linear)

    # Exact-semantics path (f32 MXU operands) — tight tolerance.
    out_f32 = jax.block_until_ready(
        lipshitz_mlp_forward(x, params, last_layer_linear,
                             compute_dtype=jnp.float32))
    np.testing.assert_allclose(np.asarray(out_f32), np.asarray(ref),
                               rtol=1e-5, atol=1e-5)

    # Default fast path (bf16 MXU operands, f32 accumulation) — loose
    # tolerance (normalized weights are bf16-quantized before the matmul).
    out_bf16 = jax.block_until_ready(
        lipshitz_mlp_forward(x, params, last_layer_linear))
    np.testing.assert_allclose(np.asarray(out_bf16), np.asarray(ref),
                               rtol=3e-2, atol=3e-2)

    # Config 2: ragged batch (exercises low-waste padding + multi-step grid),
    # GELU on the last layer too.
    key, kx2, kp2 = jax.random.split(key, 3)
    batch2, in2, sizes2 = 300, 24, [64, 64, 48]
    x2 = jax.random.normal(kx2, (batch2, in2), jnp.float32)
    params2 = init_lipshitz_mlp_params(kp2, in2, sizes2, False)
    ref2 = lipshitz_mlp_reference(x2, params2, False)

    out2_f32 = jax.block_until_ready(
        lipshitz_mlp_forward(x2, params2, False, compute_dtype=jnp.float32))
    np.testing.assert_allclose(np.asarray(out2_f32), np.asarray(ref2),
                               rtol=1e-5, atol=1e-5)

    # Same config, small tile -> more grid steps (exercises pipelining), bf16.
    out2_bf16 = jax.block_until_ready(
        lipshitz_mlp_forward(x2, params2, False, tile_n=64))
    np.testing.assert_allclose(np.asarray(out2_bf16), np.asarray(ref2),
                               rtol=3e-2, atol=3e-2)

    print("KERNEL_OK")
</pallas_src>

<mosaic_0001>
module attributes {stable_mosaic.version = 11 : i64} {
  func.func @_fused_lipshitz_mlp_kernel(%arg0: i32, %arg1: memref<8x128xf32, #tpu.memory_space<vmem>>, %arg2: memref<128x128xf32, #tpu.memory_space<vmem>>, %arg3: memref<1x128xf32, #tpu.memory_space<vmem>>, %arg4: memref<128x128xf32, #tpu.memory_space<vmem>>, %arg5: memref<1x128xf32, #tpu.memory_space<vmem>>, %arg6: memref<128x128xf32, #tpu.memory_space<vmem>>, %arg7: memref<1x128xf32, #tpu.memory_space<vmem>>, %arg8: memref<8x128xf32, #tpu.memory_space<vmem>>) attributes {dimension_semantics = [#tpu.dimension_semantics<parallel>], iteration_bounds = array<i64: 2>, scalar_prefetch = 0 : i64, scratch_operands = 0 : i64, tpu.core_type = #tpu.core_type<tc>, window_params = [{transform_indices = @transform_0, window_bounds = array<i64: 8, 128>}, {pipeline_mode = #tpu.pipeline_mode<synchronous>, transform_indices = @transform_1, window_bounds = array<i64: 128, 128>}, {pipeline_mode = #tpu.pipeline_mode<synchronous>, transform_indices = @transform_2, window_bounds = array<i64: 1, 128>}, {pipeline_mode = #tpu.pipeline_mode<synchronous>, transform_indices = @transform_3, window_bounds = array<i64: 128, 128>}, {pipeline_mode = #tpu.pipeline_mode<synchronous>, transform_indices = @transform_4, window_bounds = array<i64: 1, 128>}, {pipeline_mode = #tpu.pipeline_mode<synchronous>, transform_indices = @transform_5, window_bounds = array<i64: 128, 128>}, {pipeline_mode = #tpu.pipeline_mode<synchronous>, transform_indices = @transform_6, window_bounds = array<i64: 1, 128>}, {transform_indices = @transform_7, window_bounds = array<i64: 8, 128>}]} {
    %c0 = arith.constant 0 : index
    %c0_0 = arith.constant 0 : index
    %0 = vector.load %arg1[%c0, %c0_0] : memref<8x128xf32, #tpu.memory_space<vmem>>, vector<8x128xf32>
    %c0_1 = arith.constant 0 : index
    %c0_2 = arith.constant 0 : index
    %1 = vector.load %arg2[%c0_1, %c0_2] : memref<128x128xf32, #tpu.memory_space<vmem>>, vector<128x128xf32>
    %cst = arith.constant dense<0.000000e+00> : vector<8x128xf32>
    %2 = tpu.matmul %0, %1, %cst {dimension_numbers = #tpu.dot_dimension_numbers<[1], [0], [0], [1], [0, 0, 1, 1], [], []>} : vector<8x128xf32>, vector<128x128xf32>, vector<8x128xf32> -> vector<8x128xf32>
    %c0_3 = arith.constant 0 : index
    %c0_4 = arith.constant 0 : index
    %3 = vector.load %arg3[%c0_3, %c0_4] : memref<1x128xf32, #tpu.memory_space<vmem>>, vector<1x128xf32>
    %4 = vector.broadcast %3 : vector<1x128xf32> to vector<8x128xf32>
    %5 = arith.addf %2, %4 : vector<8x128xf32>
    %cst_5 = arith.constant 5.000000e-01 : f32
    %6 = vector.broadcast %cst_5 : f32 to vector<8x128xf32>
    %7 = arith.mulf %6, %5 : vector<8x128xf32>
    %cst_6 = arith.constant 0.707106769 : f32
    %8 = vector.broadcast %cst_6 : f32 to vector<8x128xf32>
    %9 = arith.mulf %5, %8 : vector<8x128xf32>
    %10 = math.erf %9 : vector<8x128xf32>
    %cst_7 = arith.constant 1.000000e+00 : f32
    %11 = vector.broadcast %cst_7 : f32 to vector<8x128xf32>
    %12 = arith.addf %11, %10 : vector<8x128xf32>
    %13 = arith.mulf %7, %12 : vector<8x128xf32>
    %c0_8 = arith.constant 0 : index
    %c0_9 = arith.constant 0 : index
    %14 = vector.load %arg4[%c0_8, %c0_9] : memref<128x128xf32, #tpu.memory_space<vmem>>, vector<128x128xf32>
    %cst_10 = arith.constant dense<0.000000e+00> : vector<8x128xf32>
    %15 = tpu.matmul %13, %14, %cst_10 {dimension_numbers = #tpu.dot_dimension_numbers<[1], [0], [0], [1], [0, 0, 1, 1], [], []>} : vector<8x128xf32>, vector<128x128xf32>, vector<8x128xf32> -> vector<8x128xf32>
    %c0_11 = arith.constant 0 : index
    %c0_12 = arith.constant 0 : index
    %16 = vector.load %arg5[%c0_11, %c0_12] : memref<1x128xf32, #tpu.memory_space<vmem>>, vector<1x128xf32>
    %17 = vector.broadcast %16 : vector<1x128xf32> to vector<8x128xf32>
    %18 = arith.addf %15, %17 : vector<8x128xf32>
    %cst_13 = arith.constant 5.000000e-01 : f32
    %19 = vector.broadcast %cst_13 : f32 to vector<8x128xf32>
    %20 = arith.mulf %19, %18 : vector<8x128xf32>
    %cst_14 = arith.constant 0.707106769 : f32
    %21 = vector.broadcast %cst_14 : f32 to vector<8x128xf32>
    %22 = arith.mulf %18, %21 : vector<8x128xf32>
    %23 = math.erf %22 : vector<8x128xf32>
    %cst_15 = arith.constant 1.000000e+00 : f32
    %24 = vector.broadcast %cst_15 : f32 to vector<8x128xf32>
    %25 = arith.addf %24, %23 : vector<8x128xf32>
    %26 = arith.mulf %20, %25 : vector<8x128xf32>
    %c0_16 = arith.constant 0 : index
    %c0_17 = arith.constant 0 : index
    %27 = vector.load %arg6[%c0_16, %c0_17] : memref<128x128xf32, #tpu.memory_space<vmem>>, vector<128x128xf32>
    %cst_18 = arith.constant dense<0.000000e+00> : vector<8x128xf32>
    %28 = tpu.matmul %26, %27, %cst_18 {dimension_numbers = #tpu.dot_dimension_numbers<[1], [0], [0], [1], [0, 0, 1, 1], [], []>} : vector<8x128xf32>, vector<128x128xf32>, vector<8x128xf32> -> vector<8x128xf32>
    %c0_19 = arith.constant 0 : index
    %c0_20 = arith.constant 0 : index
    %29 = vector.load %arg7[%c0_19, %c0_20] : memref<1x128xf32, #tpu.memory_space<vmem>>, vector<1x128xf32>
    %30 = vector.broadcast %29 : vector<1x128xf32> to vector<8x128xf32>
    %31 = arith.addf %28, %30 : vector<8x128xf32>
    %c0_21 = arith.constant 0 : index
    %c0_22 = arith.constant 0 : index
    %32 = vector.load %arg8[%c0_21, %c0_22] : memref<8x128xf32, #tpu.memory_space<vmem>>, vector<8x128xf32>
    tpu.vector_store %arg8[%c0_21, %c0_22], %31 {strides = array<i32>} : memref<8x128xf32, #tpu.memory_space<vmem>>, vector<8x128xf32>,
    return
  }
  func.func @transform_0(%arg0: i32) -> (i32, i32) {
    %c0_i32 = arith.constant 0 : i32
    %c0_i32_0 = arith.constant 0 : i32
    return %arg0, %c0_i32 : i32, i32
  }
  func.func @transform_1(%arg0: i32) -> (i32, i32) {
    %c0_i32 = arith.constant 0 : i32
    %c0_i32_0 = arith.constant 0 : i32
    %c0_i32_1 = arith.constant 0 : i32
    return %c0_i32, %c0_i32_0 : i32, i32
  }
  func.func @transform_2(%arg0: i32) -> (i32, i32) {
    %c0_i32 = arith.constant 0 : i32
    %c0_i32_0 = arith.constant 0 : i32
    %c0_i32_1 = arith.constant 0 : i32
    return %c0_i32, %c0_i32_0 : i32, i32
  }
  func.func @transform_3(%arg0: i32) -> (i32, i32) {
    %c0_i32 = arith.constant 0 : i32
    %c0_i32_0 = arith.constant 0 : i32
    %c0_i32_1 = arith.constant 0 : i32
    return %c0_i32, %c0_i32_0 : i32, i32
  }
  func.func @transform_4(%arg0: i32) -> (i32, i32) {
    %c0_i32 = arith.constant 0 : i32
    %c0_i32_0 = arith.constant 0 : i32
    %c0_i32_1 = arith.constant 0 : i32
    return %c0_i32, %c0_i32_0 : i32, i32
  }
  func.func @transform_5(%arg0: i32) -> (i32, i32) {
    %c0_i32 = arith.constant 0 : i32
    %c0_i32_0 = arith.constant 0 : i32
    %c0_i32_1 = arith.constant 0 : i32
    return %c0_i32, %c0_i32_0 : i32, i32
  }
  func.func @transform_6(%arg0: i32) -> (i32, i32) {
    %c0_i32 = arith.constant 0 : i32
    %c0_i32_0 = arith.constant 0 : i32
    %c0_i32_1 = arith.constant 0 : i32
    return %c0_i32, %c0_i32_0 : i32, i32
  }
  func.func @transform_7(%arg0: i32) -> (i32, i32) {
    %c0_i32 = arith.constant 0 : i32
    %c0_i32_0 = arith.constant 0 : i32
    return %arg0, %c0_i32 : i32, i32
  }
}

</mosaic_0001>

<bundles_post_ra>
// kernel: tpu_custom_call.1
= control target key start
LH: loop header
LB: loop body
LE: loop exit
PB: predicated region body
PF: predicated region fallthrough
CT: control target
= control target key end

     0   :  { %s1190_s0 = inlined_call_operand.hbm [shape: f32[16,128], index: 0, kind: input, shape index: {}]   ;;  %s1191_s1 = inlined_call_operand.hbm [shape: f32[128,128], index: 1, kind: input, shape index: {}]   ;;  %s1192_s2 = inlined_call_operand.vmem [shape: f32[1,128], index: 2, kind: input, shape index: {}]   ;;  %s1193_s3 = inlined_call_operand.hbm [shape: f32[128,128], index: 3, kind: input, shape index: {}]   ;;  %s1194_s4 = inlined_call_operand.vmem [shape: f32[1,128], index: 4, kind: input, shape index: {}]   ;;  %s1195_s5 = inlined_call_operand.hbm [shape: f32[128,128], index: 5, kind: input, shape index: {}]   ;;  %s1196_s6 = inlined_call_operand.vmem [shape: f32[1,128], index: 6, kind: input, shape index: {}]   ;;  %s1197_s7 = inlined_call_operand.hbm [shape: f32[16,128], index: 7, kind: output, shape index: {}]  }
   0x1   :  { %1198 = sst [smem:[#allocation15_spill]] %s1191_s1 }
   0x2   :  { %12 = vsyncpa [#allocation3], 0 }
   0x3   :  { %14 = vsyncpa [#allocation3 + $0x1], 0 }
   0x4   :  { %15 = vsyncpa [#allocation6], 0 }
   0x5   :  { %16 = vsyncpa [#allocation9], 0 }
   0x6   :  { %17 = vsyncpa [#allocation4], 0 }
   0x7   :  { %19 = vsyncpa [#allocation4 + $0x1], 0  ;;  %s1018_s24 = smov 0   ;;  %s1020_s25 = smov 0  }
   0x8   :  { %s1022_s26 = smov 0   ;;  %s1024_s27 = smov 0  }
   0x9 LB: > { %s1199_s1 = sld [smem:[#allocation15_spill]]  ;;  %s1042_s8 = sadd.s32 4294967295, %s971_s27   ;;  %s971_s27 = sphi %s1024_s27, %s1210_s27   ;;  %s967_s26 = sphi %s1022_s26, %s1209_s26   ;;  %s963_s25 = sphi %s1020_s25, %s1208_s25   ;;  %s959_s24 = sphi %s1018_s24, %s1207_s24  }
   0xa   : > { %p672_p0 = scmp.ge.s32.totalorder %s971_s27, 1  ;;  %p46_p1 = scmp.eq.s32.totalorder %s1042_s8, 0 }
   0xb   : > { %p208_p2 = scmp.lt.s32.totalorder %s971_s27, 3  ;;  %s973_s10 = smov [#allocation5]  }
   0xc   : > { %s221_s11 = sshll.u32 %s973_s10, 4  ;;  %s236_s14 = sshll.u32 %s1193_s3, 4  ;;  %s222_s11 = int_to_ptr.vmem [resolvable:$true] %s221_s11  ;;  %s237_s14 = int_to_ptr.hbm [resolvable:$true] %s236_s14 }
   0xd   : > { %p1047_p3 = pnand %p672_p0, %p208_p2  ;;  %s253_s18 = sshll.u32 %s1195_s5, 4  ;;  %s254_s18 = int_to_ptr.hbm [resolvable:$true] %s253_s18 }
   0xe   : > { %s974_s19 = smov [#allocation7]   ;;  %s975_s21 = smov 128  }
   0xf   : > { %s219_s30 = sshll.u32 %s1199_s1, 4  ;;  %p707_p4 = pneg %p1047_p3  ;;  %s220_s30 = int_to_ptr.hbm [resolvable:$true] %s219_s30 }
  0x10   : > { %s238_s20 = sshll.u32 %s974_s19, 4  ;;  %s976_s22 = smov 8   ;;  %s239_s20 = int_to_ptr.vmem [resolvable:$true] %s238_s20 }
  0x11   : > { %p1059_p6 = pnand %p707_p4, %p46_p1  ;;  %s977_s23 = smov [#allocation8]  }
  0x12   : > { %s255_s28 = sshll.u32 %s977_s23, 4  ;;  %s671_s29 = sadd.s32 4294967294, %s971_s27   ;;  %s256_s28 = int_to_ptr.vmem [resolvable:$true] %s255_s28 }
  0x13   : > { %710 = dma.hbm_to_vmem [thread:$0]  (!%p1059_p6), %s220_s30, 2048, %s222_s11, [#allocation6], %s975_s21, %s975_s21, %s976_s22  }
  0x14   : > { %713 = dma.hbm_to_vmem [thread:$0]  (!%p1059_p6), %s237_s14, 2048, %s239_s20, [#allocation6], %s975_s21, %s975_s21, %s976_s22  }
  0x15   : > { %716 = dma.hbm_to_vmem [thread:$0]  (!%p1059_p6), %s254_s18, 2048, %s256_s28, [#allocation9], %s975_s21, %s975_s21, %s976_s22  }
  0x16   : > { %s1074_s10 = sadd.s32 1, %s971_s27   ;;  %s32_s12 = sadd.s32 1, %s967_s26 }
  0x17   : > { %s29_s30 = ssub.s32 %s971_s27, %s1074_s10  ;;  %p39_p7 = scmp.ne.s32.totalorder %s967_s26, %s963_s25 }
  0x18   : > { %p30_p8 = scmp.eq.s32.totalorder %s29_s30, 0  ;;  %p40_p9 = scmp.eq.s32.totalorder %s971_s27, 0 }
  0x19   : > { %p45_p10 = scmp.ne.s32.totalorder %s963_s25, %s959_s24  ;;  %p195_p11 = scmp.eq.s32.totalorder %s1042_s8, 1 }
  0x1a   : > { %s1086_s11 = scalar_select %p30_p8, %s967_s26, %s32_s12  }
  0x1b   : > { %p1090_p12 = por %p46_p1, %p45_p10  ;;  %p1094_p13 = por %p195_p11, %p39_p7 }
  0x1c   : > { %p201_p0 = scmp.eq.s32.totalorder %s671_s29, 1  ;;  %p41_p2 = por %p40_p9, %p39_p7 }
  0x1d   : > { %s272_s15 = sand.u32 1, %s967_s26   ;;  %p728_p6 = scmp.lt.s32.totalorder %s971_s27, 2 }
  0x1e   : > { %p1099_p4 = por %p201_p0, %p45_p10  ;;  %s677_s17 = sshll.u32 %s272_s15, 3 }
  0x1f   : > { %s678_s18 = sshll.u32 %s971_s27, 3  ;;  %s276_s23 = scalar_lea.vmem [#allocation2], %s677_s17 }
  0x20   : > { %s280_s21 = scalar_lea.hbm %s1190_s0, %s678_s18  ;;  %s284_s28 = sshll.u32 %s276_s23, 4  ;;  %s285_s28 = int_to_ptr.vmem [resolvable:$true] %s284_s28 }
  0x21   : > { %s282_s22 = sshll.u32 %s280_s21, 4  ;;  %p1108_p8 = pnand %p728_p6, %p41_p2  ;;  %s283_s22 = int_to_ptr.hbm [resolvable:$true] %s282_s22 }
  0x22   : > { %s273_s12 = scalar_lea.sflag [#allocation3], %s272_s15  ;;  %s867_s30 = sshra.s32 %s283_s22, 4  ;;  %s868_s30 = int_to_ptr.hbm [resolvable:$true] %s867_s30 }
  0x23   : > { %s869_s1 = scalar_lea.hbm %s868_s30, 8  ;;  %p871_p9 = pneg %p1108_p8 }
  0x24   : > { %p870_p7 = scmp.ne.s32.totalorder %s868_s30, %s869_s1  ;;  %s874_s17 = scalar_lea.hbm %s1190_s0, 16 }
  0x25   : > { %p875_p0 = scmp.lt.s32.totalorder %s868_s30, %s1190_s0  ;;  %p876_p2 = scmp.lt.s32.totalorder %s874_s17, %s869_s1 }
  0x26   : > { %p872_p10 = pnand %p871_p9, %p870_p7 }
  0x27   : > { %p877_p6 = por %p876_p2, %p875_p0 }
  0x28   : > { %p873_p11 = pneg %p872_p10 }
  0x2a   : > { %p878_p5 = pnand %p877_p6, %p873_p11 }
  0x2c   : > { %881 = shalt.err (!%p878_p5)
}
  0x2d   : > { %720 = dma.hbm_to_vmem [thread:$0]  (!%p1108_p8), %s283_s22, 128, %s285_s28, %s273_s12  }
  0x2e   : > { %293 = sbr.rel (%p1047_p3) target bundleno = 583 (0x247), region = 48  ;;  %s1125_s15 = sand.u32 (!%p1047_p3), 1, %s963_s25  }
  0x2f   : > { %s680_s23 = sshll.u32 (!%p1047_p3), %s1125_s15, 3  ;;  %s296_s18 = scalar_lea.sflag (!%p1047_p3), [#allocation3], %s1125_s15 }
  0x30   : > { %s1131_s1 = scalar_lea.vmem (!%p1047_p3), [#allocation2], %s680_s23 }
  0x33   : > { %942 = dma.done.wait (%p1090_p12), %s296_s18, 128  }
  0x34   : > { %944 = vsyncadd (%p1090_p12), %s296_s18, 4294967168 }
  0x35   : > { %946 = dma.done.wait (%p46_p1), [#allocation6], 4096  }
  0x36   : > { %948 = vsyncadd (%p46_p1), [#allocation6], 4294963200 }
  0x37   : > { %950 = dma.done.wait (%p46_p1), [#allocation9], 2048  }
  0x38   : > { %952 = vsyncadd (%p46_p1), [#allocation9], 4294965248  ;;  %v362_v0 = vld [vmem:[#allocation5 + $0x78] sm:$0xff]  ;;  %v361_v1 = vld [vmem:[#allocation5 + $0x70] sm:$0xff]  ;;  %s688_s29 = sshll.u32 %s1042_s8, 3  ;;  %s345_s21 = scalar_lea.vmem [#allocation10], %s680_s23 }
  0x39   : > { %367 = vmatpush.msra.mxu0 %v362_v0  ;;  %v360_v2 = vld [vmem:[#allocation5 + $0x68] sm:$0xff]  ;;  %v359_v3 = vld [vmem:[#allocation5 + $0x60] sm:$0xff]  ;;  %v358_v4 = vld [vmem:[#allocation5 + $0x58] sm:$0xff]  ;;  %s567_s19 = scalar_lea.hbm %s1197_s7, %s688_s29  ;;  %s569_s18 = sshll.u32 %s345_s21, 4  ;;  %s570_s18 = int_to_ptr.vmem [resolvable:$true] %s569_s18 }
  0x3a   : > { %v357_v5 = vld [vmem:[#allocation5 + $0x50] sm:$0xff]  ;;  %v356_v6 = vld [vmem:[#allocation5 + $0x48] sm:$0xff]  ;;  %v355_v7 = vld [vmem:[#allocation5 + $0x40] sm:$0xff]  ;;  %s557_s9 = scalar_lea.sflag [#allocation4], %s1125_s15  ;;  %s917_s29 = scalar_lea.hbm %s1197_s7, 16 }
  0x3b   : > { %368 = vmatpush.msra.mxu0 %v361_v1  ;;  %v354_v8 = vld [vmem:[#allocation5 + $0x38] sm:$0xff]  ;;  %v353_v9 = vld [vmem:[#allocation5 + $0x30] sm:$0xff]  ;;  %v352_v10 = vld [vmem:[#allocation5 + $0x28] sm:$0xff] }
  0x3c   : > { %v351_v11 = vld [vmem:[#allocation5 + $0x20] sm:$0xff]  ;;  %v350_v12 = vld [vmem:[#allocation5 + $0x18] sm:$0xff]  ;;  %v349_v13 = vld [vmem:[#allocation5 + $0x10] sm:$0xff] }
  0x3d   : > { %369 = vmatpush.msra.mxu0 %v360_v2  ;;  %v348_v14 = vld [vmem:[#allocation5 + $0x8] sm:$0xff]  ;;  %v347_v15 = vld [vmem:[#allocation5] sm:$0xff]  ;;  %v346_v16 = vld [vmem:[%s1131_s1] sm:$0xff]  ;;  %s571_s1 = sshll.u32 %s567_s19, 4  ;;  %s572_s1 = int_to_ptr.hbm [resolvable:$true] %s571_s1 }
  0x3e   : > { %v446_v17 = vld [vmem:[#allocation7 + $0x78] sm:$0xff]  ;;  %v445_v18 = vld [vmem:[#allocation7 + $0x70] sm:$0xff]  ;;  %v444_v19 = vld [vmem:[#allocation7 + $0x68] sm:$0xff]  ;;  %s911_s8 = sshra.s32 %s572_s1, 4  ;;  %s912_s8 = int_to_ptr.hbm [resolvable:$true] %s911_s8 }
  0x3f   : > { %370 = vmatpush.msra.mxu0 %v359_v3  ;;  %451 = vmatpush.msra.mxu1 %v446_v17  ;;  %v443_v20 = vld [vmem:[#allocation7 + $0x60] sm:$0xff]  ;;  %v770_v21 = vld [vmem:[%s1192_s2] ss:$0 sm:$0xff]  ;;  %v442_v22 = vld [vmem:[#allocation7 + $0x58] sm:$0xff]  ;;  %s913_s13 = scalar_lea.hbm %s912_s8, 8  ;;  %p918_p12 = scmp.lt.s32.totalorder %s912_s8, %s1197_s7 }
  0x40   : > { %v441_v23 = vld [vmem:[#allocation7 + $0x50] sm:$0xff]  ;;  %v440_v25 = vld [vmem:[#allocation7 + $0x48] sm:$0xff]  ;;  %v439_v27 = vld [vmem:[#allocation7 + $0x40] sm:$0xff]  ;;  %p914_p1 = scmp.ne.s32.totalorder %s912_s8, %s913_s13  ;;  %p919_p8 = scmp.lt.s32.totalorder %s917_s29, %s913_s13 }
  0x41   : > { %371 = vmatpush.msra.mxu0 %v358_v4  ;;  %452 = vmatpush.msra.mxu1 %v445_v18  ;;  %v438_v29 = vld [vmem:[#allocation7 + $0x38] sm:$0xff]  ;;  %v437_v31 = vld [vmem:[#allocation7 + $0x30] sm:$0xff]  ;;  %v436_v33 = vld [vmem:[#allocation7 + $0x28] sm:$0xff] }
  0x42   : > { %v435_v36 = vld [vmem:[#allocation7 + $0x20] sm:$0xff]  ;;  %v434_v39 = vld [vmem:[#allocation7 + $0x18] sm:$0xff]  ;;  %v433_v42 = vld [vmem:[#allocation7 + $0x10] sm:$0xff]  ;;  %p915_p3 = pnand %p914_p1, %p1094_p13  ;;  %p920_p7 = por %p919_p8, %p918_p12 }
  0x43   : > { %372 = vmatpush.msra.mxu0 %v357_v5  ;;  %453 = vmatpush.msra.mxu1 %v444_v19  ;;  %v432_v45 = vld [vmem:[#allocation7 + $0x8] sm:$0xff]  ;;  %v431_v47 = vld [vmem:[#allocation7] sm:$0xff]  ;;  %v525_v17 = vld [vmem:[#allocation8 + $0x50] sm:$0xff] }
  0x44   : > { %p916_p5 = pneg %p915_p3 }
  0x45   : > { %373 = vmatpush.msra.mxu0 %v356_v6  ;;  %454 = vmatpush.msra.mxu1 %v443_v20  ;;  %v524_v20 = vld [vmem:[#allocation8 + $0x48] sm:$0xff] }
  0x46   : > { %p921_p9 = pnand %p920_p7, %p916_p5 }
  0x47   : > { %374 = vmatpush.msra.mxu0 %v355_v7  ;;  %455 = vmatpush.msra.mxu1 %v442_v22  ;;  %v523_v22 = vld [vmem:[#allocation8 + $0x40] sm:$0xff] }
  0x49   : > { %375 = vmatpush.msra.mxu0 %v354_v8  ;;  %456 = vmatpush.msra.mxu1 %v441_v23 }
  0x4b   : > { %376 = vmatpush.msra.mxu0 %v353_v9  ;;  %457 = vmatpush.msra.mxu1 %v440_v25 }
  0x4d   : > { %377 = vmatpush.msra.mxu0 %v352_v10  ;;  %458 = vmatpush.msra.mxu1 %v439_v27 }
  0x4f   : > { %378 = vmatpush.msra.mxu0 %v351_v11  ;;  %459 = vmatpush.msra.mxu1 %v438_v29  ;;  %v530_v11 = vld [vmem:[#allocation8 + $0x78] sm:$0xff] }
  0x50   : > { %535 = vmatpush.msra.mxu2 %v530_v11 }
  0x51   : > { %379 = vmatpush.msra.mxu0 %v350_v12  ;;  %460 = vmatpush.msra.mxu1 %v437_v31  ;;  %v529_v12 = vld [vmem:[#allocation8 + $0x70] sm:$0xff]  ;;  %v519_v31 = vld [vmem:[#allocation8 + $0x20] sm:$0xff] }
  0x52   : > { %536 = vmatpush.msra.mxu2 %v529_v12 }
  0x53   : > { %380 = vmatpush.msra.mxu0 %v349_v13  ;;  %461 = vmatpush.msra.mxu1 %v436_v33  ;;  %v528_v13 = vld [vmem:[#allocation8 + $0x68] sm:$0xff] }
  0x54   : > { %537 = vmatpush.msra.mxu2 %v528_v13 }
  0x55   : > { %381 = vmatpush.msra.mxu0 %v348_v14  ;;  %462 = vmatpush.msra.mxu1 %v435_v36  ;;  %v771_v14 = vld [vmem:[%s1194_s4] ss:$0 sm:$0xff] }
  0x56   : > { %v517_v36 = vld [vmem:[#allocation8 + $0x10] sm:$0xff] }
  0x57   : > { %382 = vmatpush.msra.mxu0 %v347_v15  ;;  %463 = vmatpush.msra.mxu1 %v434_v39  ;;  %v527_v15 = vld [vmem:[#allocation8 + $0x60] sm:$0xff]  ;;  %v516_v39 = vld [vmem:[#allocation8 + $0x8] sm:$0xff] }
  0x58   : > { %383 = vmatmul.f32.vlgmr.msra.gmra.mxu0 %v346_v16  ;;  %v526_v16 = vld [vmem:[#allocation8 + $0x58] sm:$0xff]  ;;  %538 = vmatpush.msra.mxu2 %v527_v15 }
  0x59   : > { %464 = vmatpush.msra.mxu1 %v433_v42 }
  0x5a   : > { %539 = vmatpush.msra.mxu2 %v526_v16 }
  0x5b   : > { %465 = vmatpush.msra.mxu1 %v432_v45 }
  0x5c   : > { %540 = vmatpush.msra.mxu2 %v525_v17 }
  0x5d   : > { %466 = vmatpush.msra.mxu1 %v431_v47 }
  0x5e   : > { %541 = vmatpush.msra.mxu2 %v524_v20 }
  0x60   : > { %542 = vmatpush.msra.mxu2 %v523_v22 }
  0xd5   : > { %v384_v24 = vpop.f32.mrf.mxu0 }
  0xd6   : > { %v385_v26 = vadd.f32 %v770_v21, %v384_v24  ;;  %v522_v24 = vld [vmem:[#allocation8 + $0x38] sm:$0xff] }
  0xd7   : > { %543 = vmatpush.msra.mxu2 %v522_v24 }
  0xd8   : > { %v388_v28 = vmul.f32 0.70710677, %v385_v26  ;;  %v387_v8 = vmul.f32 0.5, %v385_v26  ;;  %v521_v26 = vld [vmem:[#allocation8 + $0x30] sm:$0xff] }
  0xd9   : > { %544 = vmatpush.msra.mxu2 %v521_v26 }
  0xda   : > { %v389_v30 = vmul.f32 %v388_v28, %v388_v28 }
  0xdc   : > { %v390_v32 = vmin.f32 %v389_v30, 16.0 }
  0xde   : > { %v391_v34 = vmul.f32 2.1237322e-06, %v390_v32  ;;  %v402_v35 = vmul.f32 3.8918573e-05, %v390_v32 }
  0xe0   : > { %v392_v37 = vadd.f32 0.00028619796, %v391_v34  ;;  %v403_v38 = vadd.f32 0.001143296, %v402_v35  ;;  %v518_v34 = vld [vmem:[#allocation8 + $0x18] sm:$0xff] }
  0xe2   : > { %v393_v40 = vmul.f32 %v392_v37, %v390_v32  ;;  %v404_v41 = vmul.f32 %v403_v38, %v390_v32 }
  0xe4   : > { %v405_v43 = vadd.f32 0.014752088, %v404_v41  ;;  %v394_v44 = vadd.f32 0.0036580483, %v393_v40  ;;  %v515_v41 = vld [vmem:[#allocation8] sm:$0xff] }
  0xe6   : > { %v406_v46 = vmul.f32 %v405_v43, %v390_v32  ;;  %v395_v49 = vmul.f32 %v394_v44, %v390_v32 }
  0xe8   : > { %v407_v48 = vadd.f32 0.112945676, %v406_v46  ;;  %v396_v52 = vadd.f32 0.05243302, %v395_v49 }
  0xea   : > { %v408_v50 = vmul.f32 %v407_v48, %v390_v32  ;;  %v397_v55 = vmul.f32 %v396_v52, %v390_v32 }
  0xec   : > { %v409_v51 = vadd.f32 0.4994258, %v408_v50  ;;  %v398_v56 = vadd.f32 0.18741608, %v397_v55 }
  0xee   : > { %v410_v53 = vmul.f32 %v409_v51, %v390_v32  ;;  %v399_v58 = vmul.f32 %v398_v56, %v390_v32 }
  0xf0   : > { %v411_v54 = vadd.f32 1.0, %v410_v53  ;;  %v400_v62 = vadd.f32 1.1283791, %v399_v58 }
  0xf2   : > { %773 = vrcp.f32 %v411_v54  ;;  %v423_v61 = vand.u32 2147483648, %v411_v54  ;;  %v421_v0 = vand.u32 2147483647, %v411_v54  ;;  %vm417_vm1 = vweird.f32 %v411_v54 }
  0xf3   : > { %v401_v3 = vmul.f32 %v400_v62, %v388_v28  ;;  %v520_v28 = vld [vmem:[#allocation8 + $0x28] sm:$0xff] }
  0xf4   : > { %v424_v2 = vor.u32 1.1754944e-38, %v423_v61  ;;  %vm422_vm3 = vcmp.eq.f32.partialorder %v421_v0, 8.507059e+37  ;;  %545 = vmatpush.msra.mxu2 %v520_v28 }
  0xf6   : > { %546 = vmatpush.msra.mxu2 %v519_v31 }
  0xf8   : > { %v774_v57 = vpop.eup %773  ;;  %547 = vmatpush.msra.mxu2 %v518_v34 }
  0xf9   : > { %v413_v59 = vmul.f32 %v774_v57, %v411_v54  ;;  %vm418_vm0 = vweird.f32 %v774_v57 }
  0xfa   : > { %vm419_vm2 = vmor %vm417_vm1, %vm418_vm0  ;;  %548 = vmatpush.msra.mxu2 %v517_v36 }
  0xfb   : > { %v414_v60 = vsub.f32 1.0, %v413_v59 }
  0xfc   : > { %549 = vmatpush.msra.mxu2 %v516_v39 }
  0xfd   : > { %v415_v63 = vmul.f32 %v774_v57, %v414_v60 }
  0xfe   : > { %550 = vmatpush.msra.mxu2 %v515_v41 }
  0xff   : > { %v416_v1 = vadd.f32 %v774_v57, %v415_v63 }
 0x101   : > { %v420_v4 = vsel %vm419_vm2, %v774_v57, %v416_v1 }
 0x102   : > { %v425_v5 = vsel %vm422_vm3, %v424_v2, %v420_v4 }
 0x103   : > { %v426_v6 = vmul.f32 %v425_v5, %v401_v3  ;;  %v772_v5 = vld [vmem:[%s1196_s6] ss:$0 sm:$0xff] }
 0x105   : > { %v685_v7 = vclamps-f32 %v426_v6, 1.0 }
 0x107   : > { %v429_v9 = vadd.f32 1.0, %v685_v7 }
 0x109   : > { %v430_v10 = vmul.f32 %v429_v9, %v387_v8 }
 0x10b   : > { %467 = vmatmul.f32.vlgmr.msra.gmra.mxu1 %v430_v10 }
 0x188   : > { %v468_v18 = vpop.f32.mrf.mxu1 }
 0x189   : > { %v469_v19 = vadd.f32 %v771_v14, %v468_v18 }
 0x18b   : > { %v472_v21 = vmul.f32 0.70710677, %v469_v19  ;;  %v471_v2 = vmul.f32 0.5, %v469_v19 }
 0x18d   : > { %v473_v23 = vmul.f32 %v472_v21, %v472_v21 }
 0x18f   : > { %v474_v25 = vmin.f32 %v473_v23, 16.0 }
 0x191   : > { %v475_v27 = vmul.f32 2.1237322e-06, %v474_v25  ;;  %v486_v29 = vmul.f32 3.8918573e-05, %v474_v25 }
 0x193   : > { %v476_v30 = vadd.f32 0.00028619796, %v475_v27  ;;  %v487_v32 = vadd.f32 0.001143296, %v486_v29 }
 0x195   : > { %v477_v33 = vmul.f32 %v476_v30, %v474_v25  ;;  %v488_v35 = vmul.f32 %v487_v32, %v474_v25 }
 0x197   : > { %v489_v37 = vadd.f32 0.014752088, %v488_v35  ;;  %v478_v38 = vadd.f32 0.0036580483, %v477_v33 }
 0x199   : > { %v490_v40 = vmul.f32 %v489_v37, %v474_v25  ;;  %v479_v43 = vmul.f32 %v478_v38, %v474_v25 }
 0x19b   : > { %v491_v42 = vadd.f32 0.112945676, %v490_v40  ;;  %v480_v46 = vadd.f32 0.05243302, %v479_v43 }
 0x19d   : > { %v492_v44 = vmul.f32 %v491_v42, %v474_v25  ;;  %v481_v49 = vmul.f32 %v480_v46, %v474_v25 }
 0x19f   : > { %v493_v45 = vadd.f32 0.4994258, %v492_v44  ;;  %v482_v50 = vadd.f32 0.18741608, %v481_v49 }
 0x1a1   : > { %v494_v47 = vmul.f32 %v493_v45, %v474_v25  ;;  %v483_v52 = vmul.f32 %v482_v50, %v474_v25 }
 0x1a3   : > { %v495_v48 = vadd.f32 1.0, %v494_v47  ;;  %v484_v56 = vadd.f32 1.1283791, %v483_v52 }
 0x1a5   : > { %775 = vrcp.f32 %v495_v48  ;;  %v507_v55 = vand.u32 2147483648, %v495_v48  ;;  %v505_v58 = vand.u32 2147483647, %v495_v48  ;;  %vm501_vm5 = vweird.f32 %v495_v48 }
 0x1a6   : > { %v485_v61 = vmul.f32 %v484_v56, %v472_v21 }
 0x1a7   : > { %v508_v60 = vor.u32 1.1754944e-38, %v507_v55  ;;  %vm506_vm7 = vcmp.eq.f32.partialorder %v505_v58, 8.507059e+37 }
 0x1ab   : > { %v776_v51 = vpop.eup %775 }
 0x1ac   : > { %v497_v53 = vmul.f32 %v776_v51, %v495_v48  ;;  %vm502_vm4 = vweird.f32 %v776_v51 }
 0x1ad   : > { %vm503_vm6 = vmor %vm501_vm5, %vm502_vm4 }
 0x1ae   : > { %v498_v54 = vsub.f32 1.0, %v497_v53 }
 0x1b0   : > { %v499_v57 = vmul.f32 %v776_v51, %v498_v54 }
 0x1b2   : > { %v500_v59 = vadd.f32 %v776_v51, %v499_v57 }
 0x1b4   : > { %v504_v62 = vsel %vm503_vm6, %v776_v51, %v500_v59 }
 0x1b5   : > { %v509_v63 = vsel %vm506_vm7, %v508_v60, %v504_v62 }
 0x1b6   : > { %v510_v0 = vmul.f32 %v509_v63, %v485_v61 }
 0x1b8   : > { %v686_v1 = vclamps-f32 %v510_v0, 1.0 }
 0x1ba   : > { %v513_v3 = vadd.f32 1.0, %v686_v1 }
 0x1bc   : > { %v514_v4 = vmul.f32 %v513_v3, %v471_v2 }
 0x1be   : > { %551 = vmatmul.f32.vlgmr.msra.gmra.mxu2 %v514_v4 }
 0x241   : > { %v552_v6 = vpop.f32.mrf.mxu2 }
 0x242   : > { %v553_v7 = vadd.f32 %v772_v5, %v552_v6 }
 0x244   : > { %555 = vst [vmem:[%s345_s21] sm:$0xff] %v553_v7 }
 0x245   : > { %924 = shalt.err (!%p921_p9)
}
 0x246   : > { %705 = dma.vmem_to_hbm [thread:$0]  (%p1094_p13), %s570_s18, 128, %s572_s1, %s557_s9  }
 0x247 PF: > { %s583_s15 = sand.u32 1, %s959_s24   ;;  %p1206_p10 = scmp.ge.s32.totalorder %s971_s27, 2 }
 0x248   : > { %s584_s30 = scalar_lea.sflag [#allocation4], %s583_s15 }
 0x249   : > { %p722_p11 = pnand %p1206_p10, %p1099_p4 }
 0x24b   : > { %p723_p0 = pneg %p722_p11 }
 0x24d   : > { %954 = dma.done.wait (%p723_p0), %s584_s30, 128  }
 0x24e   : > { %956 = vsyncadd (%p723_p0), %s584_s30, 4294967168  ;;  %p22_p2 = scmp.ge.s32.totalorder %s1074_s10, 4   ;;  %s1207_s24 = smov %s963_s25 }
 0x24f   : > { %s1208_s25 = smov %s967_s26  ;;  %s1209_s26 = smov %s1086_s11 }
 0x250   : > { %s1210_s27 = smov %s1074_s10  ;;  %24 = sbr.rel (!%p22_p2) target bundleno = 9 (0x9), region = 105 }
 0x255   :  { %590 = vsyncpa [#allocation3], 1 }
 0x256   :  { %592 = vsyncpa [#allocation3 + $0x1], 1 }
 0x257   :  { %593 = vsyncpa [#allocation6], 1 }
 0x258   :  { %594 = vsyncpa [#allocation9], 1 }
 0x259   :  { %595 = vsyncpa [#allocation4], 1 }
 0x25a   :  { %597 = vsyncpa [#allocation4 + $0x1], 1 }

</bundles_post_ra>
